<compile_context>
chip_gen: v7x
topology: tpu7x:2x2x1
jax: 0.10.0
libtpu: 0.0.40
codegen_flags: <defaults>
</compile_context>

<pallas_src>
import functools
import math

import jax
import jax.numpy as jnp
from jax.experimental import pallas as pl
from jax.experimental.pallas import tpu as pltpu

IGNORE_INDEX = -100
_LANES = 128
_SUBLANES = 8


# ---------------------------------------------------------------------------
# Shared in-kernel helpers
# ---------------------------------------------------------------------------
def _focal_term(one_minus_pt, gamma):
    """(1 - pt) ** gamma with an integer-gamma fast path (no pow -> exp/log)."""
    g = float(gamma)
    if g == 0.0:
        return jnp.ones_like(one_minus_pt)
    if g == int(g) and 1.0 <= g <= 8.0:
        out = one_minus_pt
        for _ in range(int(g) - 1):
            out = out * one_minus_pt
        return out
    # Non-integer gamma: one_minus_pt is already clamped >= 0, so pow is safe.
    return jnp.power(one_minus_pt, g)


def _finish(sum_exp, exp_y, xym, alpha_y, validf, gamma):
    """Post-gather pointwise stage (all inputs share one dense shape).

    sum_exp = sum_c exp(x_c - m); exp_y / xym / alpha_y are the target class'
    exp(x_y - m), (x_y - m) and alpha[y].  pt is recovered from the already
    computed exponentials: no second exp on the single EUP slot.
    """
    log_pt = xym - jnp.log(sum_exp)
    pt = exp_y * pl.reciprocal(sum_exp, approx=False)   # exact: matches reference
    one_minus_pt = jnp.maximum(1.0 - pt, 0.0)
    loss = _focal_term(one_minus_pt, gamma) * (-alpha_y * log_pt)
    # Select (not multiply): padded-tail garbage may be NaN/Inf before masking.
    return jnp.where(validf != 0.0, loss, 0.0)


def _tree_lane_fold(v):
    """(R, k*128) -> (R, 128) via a pairwise tree of whole-vreg adds."""
    k = v.shape[-1] // _LANES
    chunks = [v[:, i * _LANES:(i + 1) * _LANES] for i in range(k)]
    while len(chunks) > 1:
        nxt = [chunks[i] + chunks[i + 1] for i in range(0, len(chunks) - 1, 2)]
        if len(chunks) % 2:
            nxt.append(chunks[-1])
        chunks = nxt
    return chunks[0]


def _partial_block(loss, validf):
    """Pack per-tile partials into a (2,128) f32 block (row0=sum, row1=count)."""
    if loss.ndim == 2 and loss.shape[-1] > 0 and loss.shape[-1] % _LANES == 0:
        lrow = jnp.sum(_tree_lane_fold(loss), axis=0, keepdims=True)    # (1,128)
        crow = jnp.sum(_tree_lane_fold(validf), axis=0, keepdims=True)  # (1,128)
        return jnp.concatenate([lrow, crow], axis=0)                    # (2,128)
    # Scalar fallback for tiny / non-128-aligned tiles.
    ls = jnp.sum(loss)
    cs = jnp.sum(validf)
    row = jax.lax.broadcasted_iota(jnp.int32, (2, _LANES), 0)
    col = jax.lax.broadcasted_iota(jnp.int32, (2, _LANES), 1)
    return jnp.where((row == 0) & (col == 0), ls,
                     jnp.where((row == 1) & (col == 0), cs, 0.0))


# ---------------------------------------------------------------------------
# Kernels
# ---------------------------------------------------------------------------
def _focal_kernel_spatial(cls_ref, alpha_ref, x_ref, y_ref, out_ref, *,
                          gamma, ignore_index, s_cols):
    """Classes on the leading (non-layout) axis; positions laid out (R, T) dense."""
    j = pl.program_id(1)
    _b1, c, r, tlc = x_ref.shape

    x = x_ref[...].reshape(c, r, tlc).astype(jnp.float32)   # (C, R, T) logits
    y = y_ref[...].reshape(r, tlc)                          # (R, T) int32 labels

    # log-softmax pieces over the class axis: plain VPU maxes/adds over dense vregs.
    m = jnp.max(x, axis=0)                                  # (R, T)
    xm = x - m                                              # (C, R, T)
    e = jnp.exp(xm)                                         # (C, R, T)
    sum_exp = jnp.sum(e, axis=0)                            # (R, T)

    onehot = (cls_ref[...] == y).astype(jnp.float32)        # (C, R, T); ignored -> all-zero
    exp_y = jnp.sum(onehot * e, axis=0)                     # (R, T)
    xym = jnp.sum(onehot * xm, axis=0)                      # (R, T) = x_y - m
    alpha_y = jnp.sum(onehot * alpha_ref[...], axis=0)      # (R, T)

    col = j * tlc + jax.lax.broadcasted_iota(jnp.int32, (r, tlc), 1)
    valid = jnp.logical_and(y != ignore_index, col < s_cols)
    validf = valid.astype(jnp.float32)

    loss = _finish(sum_exp, exp_y, xym, alpha_y, validf, gamma)
    out_ref[...] = _partial_block(loss, validf).reshape(out_ref.shape)


def _focal_kernel_rows(alpha_ref, x_ref, y_ref, out_ref, *,
                       gamma, ignore_index, n_total):
    """C >= 128 path: rows on sublanes, classes on lanes (lane-dense for large C)."""
    i = pl.program_id(0)
    tn, c = x_ref.shape

    x = x_ref[...].astype(jnp.float32)                      # (TN, C)
    y = y_ref[...]                                          # (TN, 1)

    m = jnp.max(x, axis=-1, keepdims=True)
    xm = x - m
    e = jnp.exp(xm)
    sum_exp = jnp.sum(e, axis=-1, keepdims=True)            # (TN, 1)

    col = jax.lax.broadcasted_iota(jnp.int32, (tn, c), 1)
    onehot = (col == y).astype(jnp.float32)
    exp_y = jnp.sum(onehot * e, axis=-1, keepdims=True)
    xym = jnp.sum(onehot * xm, axis=-1, keepdims=True)
    alpha_y = jnp.sum(onehot * alpha_ref[...], axis=-1, keepdims=True)

    row = i * tn + jax.lax.broadcasted_iota(jnp.int32, (tn, 1), 0)
    valid = jnp.logical_and(y != ignore_index, row < n_total)
    validf = valid.astype(jnp.float32)

    # Note: the (TN, 1) post-gather stage is lane-sparse, but with C >= 128 the
    # dense (TN, C) softmax dominates; kept sparse for lowering safety.
    loss = _finish(sum_exp, exp_y, xym, alpha_y, validf, gamma)
    out_ref[...] = _partial_block(loss, validf).reshape(out_ref.shape)


# ---------------------------------------------------------------------------
# Wrapper-side helpers
# ---------------------------------------------------------------------------
def _as_int32(y):
    # Avoid an extra HBM pass when labels are already int32 (the common case).
    return y if y.dtype == jnp.int32 else y.astype(jnp.int32)


def _pick_r(s):
    for r in (_SUBLANES, 4, 2):
        if s % r == 0:
            return r
    return 1


def _vmem_limit_bytes():
    try:
        cap = int(pltpu.get_tpu_info().vmem_capacity_bytes)
    except Exception:
        cap = 64 * 1024 * 1024          # safe default (v7x-sized)
    # ~70% of per-core VMEM: ~45 MiB on v7x (64 MiB), ~90 MiB on v5e/v6e (128 MiB).
    return int(cap * 0.7)


def _pick_tile(total, bytes_per_unit, budget, cap, min_steps):
    """Tile along `total`: full extent when tiny, else a multiple of 128 sized
    from the VMEM budget, capped, and split into >= min_steps grid steps (keeps
    both v7x TensorCores fed) when possible."""
    if total <= _LANES:
        return total
    t = max(_LANES, (budget // max(bytes_per_unit, 1)) // _LANES * _LANES)
    t = min(t, cap)
    if pl.cdiv(total, t) < min_steps:
        split = -(-total // min_steps)                       # ceil
        split = max(_LANES, -(-split // _LANES) * _LANES)    # round up to 128
        t = min(t, split)
    return min(t, -(-total // _LANES) * _LANES)


def _run_spatial(xr, yr, alpha_arr, gamma, ignore_index):
    """xr: (B, C, S) logits (native dtype); yr: (B, S) int32 labels."""
    b, c, s = xr.shape
    r = _pick_r(s)
    s_cols = s // r
    x4 = xr.reshape(b, c, r, s_cols)        # contiguous row-major: free reshape
    y3 = yr.reshape(b, r, s_cols)

    itemsize = jnp.dtype(xr.dtype).itemsize
    vmem_limit = _vmem_limit_bytes()
    budget = max(vmem_limit - (4 << 20), 1 << 20)
    # Per column of the (R, S/R) view: double-buffered logits + labels plus the
    # ~6 live f32 (C, R, T) temporaries and a few dense f32 per-position vectors.
    per_col = r * (2 * (c * itemsize + 4) + 6 * c * 4 + 48)
    min_steps = max(1, -(-4 // b))
    tlc = _pick_tile(s_cols, per_col, budget, 8192, min_steps)
    n_tiles = pl.cdiv(s_cols, tlc)

    cls = jnp.arange(c, dtype=jnp.int32).reshape(c, 1, 1)
    alpha3 = alpha_arr.reshape(c, 1, 1)

    kernel = functools.partial(_focal_kernel_spatial, gamma=float(gamma),
                               ignore_index=int(ignore_index), s_cols=s_cols)
    return pl.pallas_call(
        kernel,
        out_shape=jax.ShapeDtypeStruct((b, n_tiles, 2, _LANES), jnp.float32),
        grid_spec=pltpu.PrefetchScalarGridSpec(
            num_scalar_prefetch=0,
            grid=(b, n_tiles),
            in_specs=[
                pl.BlockSpec((c, 1, 1), lambda bi, j: (0, 0, 0)),      # class ids
                pl.BlockSpec((c, 1, 1), lambda bi, j: (0, 0, 0)),      # alpha
                pl.BlockSpec((1, c, r, tlc), lambda bi, j: (bi, 0, 0, j)),
                pl.BlockSpec((1, r, tlc), lambda bi, j: (bi, 0, j)),
            ],
            out_specs=pl.BlockSpec((1, 1, 2, _LANES),
                                   lambda bi, j: (bi, j, 0, 0)),
        ),
        compiler_params=pltpu.CompilerParams(
            dimension_semantics=("parallel", "parallel"),
            vmem_limit_bytes=vmem_limit),
    )(cls, alpha3, x4, y3)


def _run_rows(x, yr, alpha_arr, gamma, ignore_index):
    """x: (N, C) with C >= 128; yr: (N, 1) int32."""
    n, c = x.shape
    itemsize = jnp.dtype(x.dtype).itemsize
    vmem_limit = _vmem_limit_bytes()
    budget = max(vmem_limit - (4 << 20), 1 << 20)
    per_row = 2 * (c * itemsize + 4) + 6 * c * 4 + 48
    tn = _pick_tile(n, per_row, budget, 8192, 4)
    n_tiles = pl.cdiv(n, tn)

    kernel = functools.partial(_focal_kernel_rows, gamma=float(gamma),
                               ignore_index=int(ignore_index), n_total=n)
    return pl.pallas_call(
        kernel,
        out_shape=jax.ShapeDtypeStruct((n_tiles, 2, _LANES), jnp.float32),
        grid_spec=pltpu.PrefetchScalarGridSpec(
            num_scalar_prefetch=0,
            grid=(n_tiles,),
            in_specs=[
                pl.BlockSpec((1, c), lambda i: (0, 0)),      # alpha, resident
                pl.BlockSpec((tn, c), lambda i: (i, 0)),     # logits tile
                pl.BlockSpec((tn, 1), lambda i: (i, 0)),     # labels tile
            ],
            out_specs=pl.BlockSpec((1, 2, _LANES), lambda i: (i, 0, 0)),
        ),
        compiler_params=pltpu.CompilerParams(
            dimension_semantics=("parallel",),
            vmem_limit_bytes=vmem_limit),
    )(alpha_arr.reshape(1, c), x, yr)


def focal_loss(x, y, alpha=None, gamma=2.0, reduction="mean",
               ignore_index=IGNORE_INDEX):
    """Pallas FocalLoss forward.

    x: (B, C) or (B, C, d1..dK) raw scores in their native dtype.
    y: (B,) or (B, d1..dK) integer class labels; `ignore_index` entries are
       excluded from the loss sum and the 'mean' denominator (PyTorch filters
       them out before reducing).
    """
    if reduction not in ("mean", "sum", "none"):
        raise ValueError('Reduction must be one of: "mean", "sum", "none".')
    if reduction == "none":
        # TODO(synk): reduction='none' returns a dynamically-sized (filtered)
        # vector in PyTorch; no static-shape Pallas equivalent, only 'mean'/'sum'.
        raise NotImplementedError("reduction='none' not supported in the Pallas port")

    c = x.shape[1]
    alpha_arr = (jnp.ones((c,), jnp.float32) if alpha is None
                 else jnp.asarray(alpha, jnp.float32).reshape(c))

    if x.ndim > 2:
        b = x.shape[0]
        s = math.prod(x.shape[2:])
        partials = _run_spatial(x.reshape(b, c, s),
                                _as_int32(y).reshape(b, s),
                                alpha_arr, gamma, ignore_index)
    elif c < _LANES:
        # Small class count: one transpose pass puts classes on the cheap
        # leading axis and rows on lanes -> dense vregs for the whole kernel.
        n = x.shape[0]
        partials = _run_spatial(x.T.reshape(1, c, n),
                                _as_int32(y).reshape(1, n),
                                alpha_arr, gamma, ignore_index)
    else:
        n = x.shape[0]
        partials = _run_rows(x, _as_int32(y).reshape(n, 1),
                             alpha_arr, gamma, ignore_index)

    loss_sum = jnp.sum(partials[..., 0, :])
    cnt = jnp.sum(partials[..., 1, :])
    if reduction == "mean":
        # PyTorch module returns 0.0 when every label is ignored.
        return jnp.where(cnt > 0, loss_sum / jnp.maximum(cnt, 1.0),
                         jnp.float32(0.0))
    return loss_sum


# ---------------------------------------------------------------------------
# Pure-JAX reference matching the PyTorch forward
# ---------------------------------------------------------------------------
def _reference(x, y, alpha, gamma, ignore_index, reduction="mean"):
    c = x.shape[1]
    if x.ndim > 2:
        perm = (0,) + tuple(range(2, x.ndim)) + (1,)
        x = jnp.transpose(x, perm).reshape(-1, c)
        y = y.reshape(-1)
    if alpha is None:
        alpha = jnp.ones((c,), jnp.float32)
    valid = y != ignore_index
    ys = jnp.where(valid, y, 0)
    log_p = jax.nn.log_softmax(x.astype(jnp.float32), axis=-1)
    log_pt = jnp.take_along_axis(log_p, ys[:, None], axis=-1)[:, 0]
    ce = -alpha[ys] * log_pt
    pt = jnp.exp(log_pt)
    loss = (1.0 - pt) ** gamma * ce
    loss = jnp.where(valid, loss, 0.0)
    if reduction == "sum":
        return jnp.sum(loss)
    cnt = jnp.sum(valid.astype(jnp.float32))
    return jnp.where(cnt > 0, jnp.sum(loss) / jnp.maximum(cnt, 1.0), 0.0)


if __name__ == "__main__":
    key = jax.random.PRNGKey(0)
    kx, ky, km = jax.random.split(key, 3)

    gamma = 2.0
    alpha4 = jnp.linspace(0.5, 1.5, 4, dtype=jnp.float32)

    # 1) Segmentation-style inputs: x (B, C, H, W), y (B, H, W) with ignored pixels.
    B, C, H, W = 2, 4, 16, 16
    x = jax.random.normal(kx, (B, C, H, W), jnp.float32)
    y = jax.random.randint(ky, (B, H, W), 0, C, dtype=jnp.int32)
    y = jnp.where(jax.random.bernoulli(km, 0.1, (B, H, W)), IGNORE_INDEX, y)

    out = jax.block_until_ready(focal_loss(x, y, alpha=alpha4, gamma=gamma))
    ref = _reference(x, y, alpha4, gamma, IGNORE_INDEX, "mean")
    assert jnp.allclose(out, ref, atol=1e-5, rtol=1e-5), (out, ref)

    out_s = jax.block_until_ready(
        focal_loss(x, y, alpha=alpha4, gamma=gamma, reduction="sum"))
    ref_s = _reference(x, y, alpha4, gamma, IGNORE_INDEX, "sum")
    assert jnp.allclose(out_s, ref_s, atol=1e-4, rtol=1e-5), (out_s, ref_s)

    # 2) Larger spatial extent: multi-tile (2x2) grid + fully dense (8, T) path.
    H2 = W2 = 64
    x2 = jax.random.normal(kx, (B, C, H2, W2), jnp.float32)
    y2 = jax.random.randint(ky, (B, H2, W2), 0, C, dtype=jnp.int32)
    y2 = jnp.where(jax.random.bernoulli(km, 0.1, (B, H2, W2)), IGNORE_INDEX, y2)
    out2 = jax.block_until_ready(focal_loss(x2, y2, alpha=alpha4, gamma=gamma))
    ref2 = _reference(x2, y2, alpha4, gamma, IGNORE_INDEX, "mean")
    assert jnp.allclose(out2, ref2, atol=1e-5, rtol=1e-5), (out2, ref2)

    # bf16 logits: native-dtype DMA, upcast in VMEM.
    xb = x2.astype(jnp.bfloat16)
    outb = jax.block_until_ready(focal_loss(xb, y2, alpha=alpha4, gamma=gamma))
    refb = _reference(xb, y2, alpha4, gamma, IGNORE_INDEX, "mean")
    assert jnp.allclose(outb, refb, atol=1e-4, rtol=1e-4), (outb, refb)

    # 3) Plain (batch, C) classification, small class count (spatial dispatch).
    x3 = jax.random.normal(kx, (6, 8), jnp.float32)
    y3 = jax.random.randint(ky, (6,), 0, 8, dtype=jnp.int32).at[0].set(IGNORE_INDEX)
    out3 = jax.block_until_ready(focal_loss(x3, y3, gamma=gamma))
    ref3 = _reference(x3, y3, None, gamma, IGNORE_INDEX, "mean")
    assert jnp.allclose(out3, ref3, atol=1e-5, rtol=1e-5), (out3, ref3)

    # 4) Wide class count (rows kernel, classes on lanes).
    x4 = jax.random.normal(kx, (256, 256), jnp.float32)
    y4 = jax.random.randint(ky, (256,), 0, 256, dtype=jnp.int32)
    out4 = jax.block_until_ready(focal_loss(x4, y4, gamma=gamma))
    ref4 = _reference(x4, y4, None, gamma, IGNORE_INDEX, "mean")
    assert jnp.allclose(out4, ref4, atol=1e-5, rtol=1e-5), (out4, ref4)

    # 5) Everything ignored -> 0.0 (matches the PyTorch early-return).
    y5 = jnp.full((B, H, W), IGNORE_INDEX, jnp.int32)
    out5 = jax.block_until_ready(focal_loss(x, y5, alpha=alpha4, gamma=gamma))
    assert jnp.allclose(out5, 0.0), out5

    print("KERNEL_OK")
</pallas_src>

<mosaic_0001>
module attributes {stable_mosaic.version = 11 : i64} {
  func.func @_focal_kernel_spatial(%arg0: i32, %arg1: i32, %arg2: memref<4x1x1xi32, #tpu.memory_space<vmem>>, %arg3: memref<4x1x1xf32, #tpu.memory_space<vmem>>, %arg4: memref<1x4x8x32xf32, #tpu.memory_space<vmem>>, %arg5: memref<1x8x32xi32, #tpu.memory_space<vmem>>, %arg6: memref<1x1x2x128xf32, #tpu.memory_space<vmem>>) attributes {dimension_semantics = [#tpu.dimension_semantics<parallel>, #tpu.dimension_semantics<parallel>], iteration_bounds = array<i64: 2, 1>, scalar_prefetch = 0 : i64, scratch_operands = 0 : i64, tpu.core_type = #tpu.core_type<tc>, window_params = [{pipeline_mode = #tpu.pipeline_mode<synchronous>, transform_indices = @transform_0, window_bounds = array<i64: 4, 1, 1>}, {pipeline_mode = #tpu.pipeline_mode<synchronous>, transform_indices = @transform_1, window_bounds = array<i64: 4, 1, 1>}, {transform_indices = @transform_2, window_bounds = array<i64: 1, 4, 8, 32>}, {transform_indices = @transform_3, window_bounds = array<i64: 1, 8, 32>}, {transform_indices = @transform_4, window_bounds = array<i64: 1, 1, 2, 128>}]} {
    %c0 = arith.constant 0 : index
    %c0_0 = arith.constant 0 : index
    %c0_1 = arith.constant 0 : index
    %c0_2 = arith.constant 0 : index
    %0 = vector.load %arg4[%c0, %c0_0, %c0_1, %c0_2] : memref<1x4x8x32xf32, #tpu.memory_space<vmem>>, vector<1x4x8x32xf32>
    %1 = vector.shape_cast %0 : vector<1x4x8x32xf32> to vector<4x8x32xf32>
    %c0_3 = arith.constant 0 : index
    %c0_4 = arith.constant 0 : index
    %c0_5 = arith.constant 0 : index
    %2 = vector.load %arg5[%c0_3, %c0_4, %c0_5] : memref<1x8x32xi32, #tpu.memory_space<vmem>>, vector<1x8x32xi32>
    %3 = vector.shape_cast %2 : vector<1x8x32xi32> to vector<8x32xi32>
    %cst = arith.constant dense<0xFF800000> : vector<8x32xf32>
    %4 = vector.multi_reduction <maximumf>, %1, %cst [0] : vector<4x8x32xf32> to vector<8x32xf32>
    %5 = vector.shape_cast %4 : vector<8x32xf32> to vector<1x8x32xf32>
    %6 = vector.broadcast %5 : vector<1x8x32xf32> to vector<4x8x32xf32>
    %7 = arith.subf %1, %6 : vector<4x8x32xf32>
    %8 = math.exp %7 : vector<4x8x32xf32>
    %cst_6 = arith.constant dense<0.000000e+00> : vector<8x32xf32>
    %9 = vector.multi_reduction <add>, %8, %cst_6 [0] : vector<4x8x32xf32> to vector<8x32xf32>
    %c0_7 = arith.constant 0 : index
    %c0_8 = arith.constant 0 : index
    %c0_9 = arith.constant 0 : index
    %10 = vector.load %arg2[%c0_7, %c0_8, %c0_9] : memref<4x1x1xi32, #tpu.memory_space<vmem>>, vector<4x1x1xi32>
    %11 = vector.shape_cast %3 : vector<8x32xi32> to vector<1x8x32xi32>
    %12 = vector.broadcast %10 : vector<4x1x1xi32> to vector<4x8x32xi32>
    %13 = vector.broadcast %11 : vector<1x8x32xi32> to vector<4x8x32xi32>
    %14 = arith.cmpi eq, %12, %13 : vector<4x8x32xi32>
    %15 = arith.extui %14 : vector<4x8x32xi1> to vector<4x8x32xi32>
    %16 = arith.sitofp %15 : vector<4x8x32xi32> to vector<4x8x32xf32>
    %17 = arith.mulf %16, %8 : vector<4x8x32xf32>
    %cst_10 = arith.constant dense<0.000000e+00> : vector<8x32xf32>
    %18 = vector.multi_reduction <add>, %17, %cst_10 [0] : vector<4x8x32xf32> to vector<8x32xf32>
    %19 = arith.mulf %16, %7 : vector<4x8x32xf32>
    %cst_11 = arith.constant dense<0.000000e+00> : vector<8x32xf32>
    %20 = vector.multi_reduction <add>, %19, %cst_11 [0] : vector<4x8x32xf32> to vector<8x32xf32>
    %c0_12 = arith.constant 0 : index
    %c0_13 = arith.constant 0 : index
    %c0_14 = arith.constant 0 : index
    %21 = vector.load %arg3[%c0_12, %c0_13, %c0_14] : memref<4x1x1xf32, #tpu.memory_space<vmem>>, vector<4x1x1xf32>
    %22 = vector.broadcast %21 : vector<4x1x1xf32> to vector<4x8x32xf32>
    %23 = arith.mulf %16, %22 : vector<4x8x32xf32>
    %cst_15 = arith.constant dense<0.000000e+00> : vector<8x32xf32>
    %24 = vector.multi_reduction <add>, %23, %cst_15 [0] : vector<4x8x32xf32> to vector<8x32xf32>
    %c32_i32 = arith.constant 32 : i32
    %25 = arith.muli %arg1, %c32_i32 : i32
    %26 = tpu.iota {dimensions = array<i32: 1>} : vector<8x32xi32>
    %27 = vector.broadcast %25 : i32 to vector<8x32xi32>
    %28 = arith.addi %27, %26 : vector<8x32xi32>
    %c-100_i32 = arith.constant -100 : i32
    %29 = vector.broadcast %c-100_i32 : i32 to vector<8x32xi32>
    %30 = arith.cmpi ne, %3, %29 : vector<8x32xi32>
    %c32_i32_16 = arith.constant 32 : i32
    %31 = vector.broadcast %c32_i32_16 : i32 to vector<8x32xi32>
    %32 = arith.cmpi slt, %28, %31 : vector<8x32xi32>
    %33 = arith.andi %30, %32 : vector<8x32xi1>
    %34 = arith.extui %33 : vector<8x32xi1> to vector<8x32xi32>
    %35 = arith.sitofp %34 : vector<8x32xi32> to vector<8x32xf32>
    %36 = math.log %9 : vector<8x32xf32>
    %37 = arith.subf %20, %36 : vector<8x32xf32>
    %38 = tpu.reciprocal %9 : vector<8x32xf32> -> vector<8x32xf32>
    %39 = arith.mulf %18, %38 : vector<8x32xf32>
    %cst_17 = arith.constant 1.000000e+00 : f32
    %40 = vector.broadcast %cst_17 : f32 to vector<8x32xf32>
    %41 = arith.subf %40, %39 : vector<8x32xf32>
    %cst_18 = arith.constant 0.000000e+00 : f32
    %42 = vector.broadcast %cst_18 : f32 to vector<8x32xf32>
    %43 = arith.maximumf %41, %42 : vector<8x32xf32>
    %44 = arith.mulf %43, %43 : vector<8x32xf32>
    %cst_19 = arith.constant 0.000000e+00 : f32
    %45 = vector.broadcast %cst_19 : f32 to vector<8x32xf32>
    %46 = arith.subf %45, %24 : vector<8x32xf32>
    %47 = arith.mulf %46, %37 : vector<8x32xf32>
    %48 = arith.mulf %44, %47 : vector<8x32xf32>
    %cst_20 = arith.constant 0.000000e+00 : f32
    %49 = vector.broadcast %cst_20 : f32 to vector<8x32xf32>
    %50 = arith.cmpf one, %35, %49 : vector<8x32xf32>
    %cst_21 = arith.constant 0.000000e+00 : f32
    %51 = vector.broadcast %cst_21 : f32 to vector<8x32xf32>
    %52 = arith.select %50, %48, %51 : vector<8x32xi1>, vector<8x32xf32>
    %53 = vector.shape_cast %52 : vector<8x32xf32> to vector<1x8x32xf32>
    %cst_22 = arith.constant dense<0.000000e+00> : vector<1xf32>
    %54 = vector.multi_reduction <add>, %53, %cst_22 [1, 2] : vector<1x8x32xf32> to vector<1xf32>
    %55 = vector.shape_cast %54 : vector<1xf32> to vector<1x1x1xf32>
    %56 = vector.extract %55[0, 0, 0] : f32 from vector<1x1x1xf32>
    %57 = vector.shape_cast %35 : vector<8x32xf32> to vector<1x8x32xf32>
    %cst_23 = arith.constant dense<0.000000e+00> : vector<1xf32>
    %58 = vector.multi_reduction <add>, %57, %cst_23 [1, 2] : vector<1x8x32xf32> to vector<1xf32>
    %59 = vector.shape_cast %58 : vector<1xf32> to vector<1x1x1xf32>
    %60 = vector.extract %59[0, 0, 0] : f32 from vector<1x1x1xf32>
    %61 = tpu.iota {dimensions = array<i32: 0>} : vector<2x128xi32>
    %62 = tpu.iota {dimensions = array<i32: 1>} : vector<2x128xi32>
    %c0_i32 = arith.constant 0 : i32
    %63 = vector.broadcast %c0_i32 : i32 to vector<2x128xi32>
    %64 = arith.cmpi eq, %61, %63 : vector<2x128xi32>
    %c0_i32_24 = arith.constant 0 : i32
    %65 = vector.broadcast %c0_i32_24 : i32 to vector<2x128xi32>
    %66 = arith.cmpi eq, %62, %65 : vector<2x128xi32>
    %67 = arith.andi %64, %66 : vector<2x128xi1>
    %c1_i32 = arith.constant 1 : i32
    %68 = vector.broadcast %c1_i32 : i32 to vector<2x128xi32>
    %69 = arith.cmpi eq, %61, %68 : vector<2x128xi32>
    %c0_i32_25 = arith.constant 0 : i32
    %70 = vector.broadcast %c0_i32_25 : i32 to vector<2x128xi32>
    %71 = arith.cmpi eq, %62, %70 : vector<2x128xi32>
    %72 = arith.andi %69, %71 : vector<2x128xi1>
    %cst_26 = arith.constant 0.000000e+00 : f32
    %73 = vector.broadcast %60 : f32 to vector<2x128xf32>
    %74 = vector.broadcast %cst_26 : f32 to vector<2x128xf32>
    %75 = arith.select %72, %73, %74 : vector<2x128xi1>, vector<2x128xf32>
    %76 = vector.broadcast %56 : f32 to vector<2x128xf32>
    %77 = arith.select %67, %76, %75 : vector<2x128xi1>, vector<2x128xf32>
    %78 = vector.shape_cast %77 : vector<2x128xf32> to vector<1x1x2x128xf32>
    %c0_27 = arith.constant 0 : index
    %c0_28 = arith.constant 0 : index
    %c0_29 = arith.constant 0 : index
    %c0_30 = arith.constant 0 : index
    %79 = vector.load %arg6[%c0_27, %c0_28, %c0_29, %c0_30] : memref<1x1x2x128xf32, #tpu.memory_space<vmem>>, vector<1x1x2x128xf32>
    tpu.vector_store %arg6[%c0_27, %c0_28, %c0_29, %c0_30], %78 {strides = array<i32>} : memref<1x1x2x128xf32, #tpu.memory_space<vmem>>, vector<1x1x2x128xf32>,
    return
  }
  func.func @transform_0(%arg0: i32, %arg1: i32) -> (i32, i32, i32) {
    %c0_i32 = arith.constant 0 : i32
    %c0_i32_0 = arith.constant 0 : i32
    %c0_i32_1 = arith.constant 0 : i32
    %c0_i32_2 = arith.constant 0 : i32
    return %c0_i32, %c0_i32_0, %c0_i32_1 : i32, i32, i32
  }
  func.func @transform_1(%arg0: i32, %arg1: i32) -> (i32, i32, i32) {
    %c0_i32 = arith.constant 0 : i32
    %c0_i32_0 = arith.constant 0 : i32
    %c0_i32_1 = arith.constant 0 : i32
    %c0_i32_2 = arith.constant 0 : i32
    return %c0_i32, %c0_i32_0, %c0_i32_1 : i32, i32, i32
  }
  func.func @transform_2(%arg0: i32, %arg1: i32) -> (i32, i32, i32, i32) {
    %c0_i32 = arith.constant 0 : i32
    %c0_i32_0 = arith.constant 0 : i32
    %c0_i32_1 = arith.constant 0 : i32
    return %arg0, %c0_i32, %c0_i32_0, %arg1 : i32, i32, i32, i32
  }
  func.func @transform_3(%arg0: i32, %arg1: i32) -> (i32, i32, i32) {
    %c0_i32 = arith.constant 0 : i32
    %c0_i32_0 = arith.constant 0 : i32
    return %arg0, %c0_i32, %arg1 : i32, i32, i32
  }
  func.func @transform_4(%arg0: i32, %arg1: i32) -> (i32, i32, i32, i32) {
    %c0_i32 = arith.constant 0 : i32
    %c0_i32_0 = arith.constant 0 : i32
    %c0_i32_1 = arith.constant 0 : i32
    return %arg0, %arg1, %c0_i32, %c0_i32_0 : i32, i32, i32, i32
  }
}

</mosaic_0001>

<bundles_post_ra>
// kernel: tpu_custom_call.1
= control target key start
LH: loop header
LB: loop body
LE: loop exit
PB: predicated region body
PF: predicated region fallthrough
CT: control target
= control target key end

     0   :  { %9 = vsyncpa [#allocation3], 0  ;;  %s1075_s0 = inlined_call_operand.vmem [shape: s32[4,1,1], index: 0, kind: input, shape index: {}]   ;;  %s1076_s1 = inlined_call_operand.vmem [shape: f32[4,1,1], index: 1, kind: input, shape index: {}]   ;;  %s1077_s2 = inlined_call_operand.hbm [shape: f32[2,4,8,32], index: 2, kind: input, shape index: {}]   ;;  %s1078_s3 = inlined_call_operand.vmem [shape: s32[2,8,32], index: 3, kind: input, shape index: {}]   ;;  %s1079_s4 = inlined_call_operand.hbm [shape: f32[2,1,2,128], index: 4, kind: output, shape index: {}]  }
   0x1   :  { %11 = vsyncpa [#allocation3 + $0x1], 0 }
   0x2   :  { %12 = vsyncpa [#allocation4], 0 }
   0x3   :  { %14 = vsyncpa [#allocation4 + $0x1], 0  ;;  %s834_s15 = smov 0   ;;  %s836_s16 = smov 0  }
   0x4   :  { %s838_s17 = smov 0   ;;  %s840_s18 = smov 0  }
   0x5   :  { %s842_s19 = smov 0   ;;  %s844_s20 = smov 0  }
   0x6 LB: > { %s576_s21 = sadd.s32 4294967295, %s801_s20   ;;  %s577_s22 = sadd.s32 4294967294, %s801_s20   ;;  %s801_s20 = sphi %s844_s20, %s20_s20   ;;  %s797_s19 = sphi %s842_s19, %s1094_s19   ;;  %s793_s18 = sphi %s840_s18, %s1093_s18   ;;  %s789_s17 = sphi %s838_s17, %s1092_s17   ;;  %s785_s16 = sphi %s836_s16, %s1091_s16   ;;  %s781_s15 = sphi %s834_s15, %s1090_s15  }
   0x7   : > { %s32_s23 = sadd.s32 1, %s797_s19  ;;  %s83_s24 = sadd.s32 1, %s789_s17 }
   0x8   : > { %p34_p0 = scmp.ge.s32.totalorder %s32_s23, 2  ;;  %p90_p1 = scmp.ne.s32.totalorder %s789_s17, %s785_s16 }
   0x9   : > { %p91_p2 = scmp.eq.s32.totalorder %s801_s20, 0  ;;  %p96_p3 = scmp.ne.s32.totalorder %s785_s16, %s781_s15 }
   0xa   : > { %s1096_s23 = smov (%p34_p0, %s32_s23), 0  ;;  %p97_p5 = scmp.eq.s32.totalorder %s576_s21, 0 }
   0xb   : > { %p875_p4 = por %p91_p2, %p90_p1  ;;  %s78_s26 = ssub.s32 %s797_s19, %s1096_s23 }
   0xc   : > { %p150_p6 = scmp.eq.s32.totalorder %s576_s21, 1  ;;  %p81_p7 = scmp.eq.s32.totalorder %s78_s26, 0 }
   0xd   : > { %p881_p8 = por %p97_p5, %p96_p3  ;;  %p156_p10 = scmp.eq.s32.totalorder %s577_s22, 1 }
   0xe   : > { %p885_p9 = por %p150_p6, %p90_p1  ;;  %p621_p13 = scmp.lt.s32.totalorder %s801_s20, 2 }
   0xf   : > { %s890_s29 = scalar_select %p81_p7, %s789_s17, %s83_s24  }
  0x10   : > { %s1083_s28 = scalar_select %p885_p9, 1, 0 }
  0x11   : > { %p892_p11 = por %p156_p10, %p96_p3  ;;  %s182_s5 = sand.u32 1, %s789_s17  }
  0x12   : > { %s580_s6 = sshll.u32 %s182_s5, 5  ;;  %s604_s7 = sshll.u32 %s797_s19, 9 }
  0x13   : > { %s1084_s30 = scalar_select %p892_p11, 1, 0 }
  0x14   : > { %s903_s10 = scalar_lea.hbm %s1077_s2, %s604_s7  ;;  %s186_s11 = scalar_lea.vmem [#allocation2], %s580_s6 }
  0x15   : > { %s194_s12 = sshll.u32 %s186_s11, 4  ;;  %p909_p0 = pnand %p621_p13, %p875_p4  ;;  %s905_s12 = int_to_ptr.vmem [resolvable:$true] %s194_s12 }
  0x16   : > { %s914_s14 = scalar_lea.sflag [#allocation3], %s182_s5  ;;  %s689_s21 = scalar_lea.hbm %s903_s10, 512 }
  0x17   : > { %p690_p2 = scmp.ne.s32.totalorder %s903_s10, %s689_s21  ;;  %p691_p3 = pneg %p909_p0 }
  0x18   : > { %s694_s25 = scalar_lea.hbm %s1077_s2, 1024  ;;  %p695_p4 = scmp.lt.u32.totalorder %s903_s10, %s1077_s2 }
  0x19   : > { %p692_p5 = pnand %p691_p3, %p690_p2  ;;  %p696_p7 = scmp.lt.u32.totalorder %s694_s25, %s689_s21 }
  0x1a   : > { %p698_p13 = scmp.lt.u32.totalorder %s689_s21, %s903_s10 }
  0x1b   : > { %p693_p6 = pneg %p692_p5  ;;  %p697_p10 = por %p696_p7, %p695_p4 }
  0x1d   : > { %p699_p12 = por %p698_p13, %p697_p10 }
  0x1f   : > { %p700_p1 = pnand %p699_p12, %p693_p6 }
  0x21   : > { %703 = shalt.err (!%p700_p1)
}
  0x22   : > { %s704_s5 = scalar_lea.vmem %s905_s12, 512  ;;  %s803_s7 = smov [#allocation2]  }
  0x23   : > { %p705_p2 = scmp.ne.s32.totalorder %s905_s12, %s704_s5  ;;  %s709_s8 = sshll.u32 %s803_s7, 4  ;;  %s710_s8 = int_to_ptr.vmem [resolvable:$false] %s709_s8 }
  0x24   : > { %s711_s9 = scalar_lea.vmem %s710_s8, 1024  ;;  %p712_p9 = scmp.lt.s32.totalorder %s905_s12, %s710_s8 }
  0x25   : > { %p707_p5 = pnand %p705_p2, %p691_p3  ;;  %p713_p4 = scmp.lt.s32.totalorder %s711_s9, %s704_s5 }
  0x27   : > { %p708_p11 = pneg %p707_p5  ;;  %p714_p7 = por %p713_p4, %p712_p9 }
  0x29   : > { %p715_p10 = pnand %p714_p7, %p708_p11 }
  0x2b   : > { %718 = shalt.err (!%p715_p10)
}
  0x2c   : > { %s804_s11 = smov 128   ;;  %s805_s21 = smov 8  }
  0x2d   : > { %616 = dma.hbm_to_vmem [thread:$0]  (!%p909_p0), %s903_s10, 512, %s905_s12, %s914_s14, %s804_s11, %s804_s11, %s805_s21  }
  0x2e   : > { %p212_p12 = scmp.lt.s32.totalorder %s801_s20, 3  ;;  %p1086_p1 = scmp.ge.s32.totalorder %s801_s20, 1 }
  0x30   : > { %p213_p3 = pnand %p1086_p1, %p212_p12 }
  0x31   : > { %s946_s22 = sand.u32 (!%p213_p3), 1, %s785_s16  }
  0x32   : > { %216 = sbr.rel (%p213_p3) target bundleno = 437 (0x1b5), region = 36  ;;  %s584_s24 = sshll.u32 (!%p213_p3), %s946_s22, 5 }
  0x33   : > { %s219_s25 = scalar_lea.sflag (!%p213_p3), [#allocation3], %s946_s22  ;;  %s950_s26 = scalar_lea.vmem (!%p213_p3), [#allocation2], %s584_s24 }
  0x39   : > { %772 = dma.done.wait (%p881_p8), %s219_s25, 512  }
  0x3a   : > { %774 = vsyncadd (%p881_p8), %s219_s25, 4294966784  ;;  %v806_v0 = vmov 0   ;;  %v589_v1 = vld [vmem:[%s1075_s0 + $0x2] ss:$0 sm:$0xff]  ;;  %v587_v2 = vld [vmem:[%s1075_s0] ss:$0 sm:$0xff]  ;;  %v411_v9 = vlaneseq }
  0x3b   : > { %676 = vset.pattern.permute.xlu1 %v806_v0  ;;  %675 = vset.pattern.permute.xlu0 %v806_v0  ;;  %v590_v3 = vld [vmem:[%s1075_s0 + $0x3] ss:$0 sm:$0xff]  ;;  %v588_v4 = vld [vmem:[%s1075_s0 + $0x1] ss:$0 sm:$0xff]  ;;  %v595_v6 = vld [vmem:[%s1076_s1] ss:$0 sm:$0xff] }
  0x3c   : > { %320 = vperm.xlu1 %676, %v589_v1   ;;  %314 = vperm.xlu0 %675, %v587_v2   ;;  %v596_v5 = vld [vmem:[%s1076_s1 + $0x1] ss:$0 sm:$0xff]  ;;  %v598_v7 = vld [vmem:[%s1076_s1 + $0x3] ss:$0 sm:$0xff]  ;;  %v597_v8 = vld [vmem:[%s1076_s1 + $0x2] ss:$0 sm:$0xff] }
  0x3d   : > { %p254_p8 = scmp.lt.s32.totalorder %s793_s18, 1  ;;  %v986_v10 = vand.u32 127, %v411_v9  ;;  %v807_v12 = vmov 0.0   ;;  %vm266_vm3 = vcmask 261120   ;;  %v261_v15 = vld [vmem:[%s950_s26] sm:$0xff]  ;;  %v262_v16 = vld [vmem:[%s950_s26 + $0x8] sm:$0xff] }
  0x3e   : > { %v263_v17 = vld [vmem:[%s950_s26 + $0x10] sm:$0xff]  ;;  %v264_v18 = vld [vmem:[%s950_s26 + $0x18] sm:$0xff]  ;;  %v267_v19 = vsel %vm266_vm3, %v261_v15, -inf  ;;  %v268_v20 = vsel %vm266_vm3, %v262_v16, -inf  ;;  %s585_s26 = sshll.u32 %s946_s22, 1  ;;  %s601_s7 = sshll.u32 %s793_s18, 5 }
  0x3f   : > { %s255_s13 = scalar_select %p254_p8, %s793_s18, 1  ;;  %vm416_vm1 = vcmp.lt.s32.totalorder %v986_v10, 32  ;;  %v269_v21 = vsel %vm266_vm3, %v263_v17, -inf  ;;  %v270_v22 = vsel %vm266_vm3, %v264_v18, -inf  ;;  %v271_v23 = vmax.f32 %v267_v19, %v268_v20 }
  0x40   : > { %323 = vperm.xlu1 %676, %v590_v3   ;;  %317 = vperm.xlu0 %675, %v588_v4   ;;  %v272_v24 = vmax.f32 %v269_v21, %v270_v22  ;;  %vm456_vm9 = vcmp.eq.s32.totalorder %v986_v10, 0  ;;  %s253_s9 = scalar_lea.vmem [#allocation5], %s585_s26  ;;  %s1026_s10 = scalar_lea.hbm %s1079_s4, %s601_s7 }
  0x41   : > { %s586_s14 = sshll.u32 %s255_s13, 3  ;;  %s480_s11 = sshll.u32 %s253_s9, 4  ;;  %s1028_s11 = int_to_ptr.vmem [resolvable:$true] %s480_s11 }
  0x42   : > { %s260_s27 = scalar_lea.vmem %s1078_s3, %s586_s14  ;;  %v273_v25 = vmax.f32 %v271_v23, %v272_v24  ;;  %s466_s18 = scalar_lea.sflag [#allocation4], %s946_s22 }
  0x43   : > { %v265_v11 = vld [vmem:[%s260_s27] sm:$0xff]  ;;  %s719_s12 = scalar_lea.vmem %s1028_s11, 32  ;;  %p1087_p11 = scmp.ne.s32.totalorder %s1083_s28, 0 }
  0x44   : > { %388 = vperm.xlu1 %676, %v596_v5   ;;  %384 = vperm.xlu0 %675, %v595_v6   ;;  %vm415_vm0 = vcmp.ne.s32.totalorder %v265_v11, 4294967196  ;;  %v274_v26 = vsub.f32 %v261_v15, %v273_v25  ;;  %v275_v27 = vsub.f32 %v262_v16, %v273_v25  ;;  %v276_v29 = vsub.f32 %v263_v17, %v273_v25  ;;  %p720_p9 = scmp.ne.s32.totalorder %s1028_s11, %s719_s12  ;;  %s808_s13 = smov [#allocation5]  }
  0x45   : > { %vm417_vm2 = vmand %vm415_vm0, %vm416_vm1  ;;  %v277_v32 = vsub.f32 %v264_v18, %v273_v25  ;;  %s723_s14 = sshll.u32 %s808_s13, 4  ;;  %s724_s14 = int_to_ptr.vmem [resolvable:$false] %s723_s14 }
  0x46   : > { %v989_v13 = vsel %vm417_vm2, 1.0, %v807_v12  ;;  %v278_v28 = vmul.f32 1.442695, %v274_v26  ;;  %v280_v30 = vmul.f32 1.442695, %v275_v27  ;;  %p721_p0 = pnand %p720_p9, %p1087_p11  ;;  %s725_s6 = scalar_lea.vmem %s724_s14, 64 }
  0x47   : > { %v443_v14 = vsel %vm266_vm3, %v989_v13, 0.0  ;;  %v282_v31 = vmul.f32 1.442695, %v276_v29  ;;  %v284_v33 = vmul.f32 1.442695, %v277_v32  ;;  %vm431_vm8 = vcmp.ne.f32.partialorder %v989_v13, 0.0  ;;  %p726_p13 = scmp.lt.s32.totalorder %s1028_s11, %s724_s14  ;;  %p727_p2 = scmp.lt.s32.totalorder %s725_s6, %s719_s12 }
  0x48   : > { %396 = vperm.xlu1 %676, %v598_v7   ;;  %392 = vperm.xlu0 %675, %v597_v8   ;;  %677 = vpow2.f32 %v278_v28  ;;  %p722_p6 = pneg %p721_p0 }
  0x49   : > { %679 = vpow2.f32 %v280_v30  ;;  %p728_p5 = por %p727_p2, %p726_p13 }
  0x4a   : > { %681 = vpow2.f32 %v282_v31 }
  0x4b   : > { %683 = vpow2.f32 %v284_v33  ;;  %p729_p4 = pnand %p728_p5, %p722_p6 }
  0x52   : > { %v678_v34 = vpop.eup %677 }
  0x53   : > { %v680_v35 = vpop.eup %679  ;;  %v286_v36 = vsel %vm266_vm3, %v678_v34, 0.0 }
  0x54   : > { %v287_v37 = vsel %vm266_vm3, %v680_v35, 0.0  ;;  %v682_v38 = vpop.eup %681 }
  0x55   : > { %v288_v39 = vadd.f32 %v287_v37, %v286_v36  ;;  %v289_v40 = vsel %vm266_vm3, %v682_v38, 0.0  ;;  %v684_v41 = vpop.eup %683 }
  0x56   : > { %v291_v43 = vsel %vm266_vm3, %v684_v41, 0.0 }
  0x57   : > { %v290_v42 = vadd.f32 %v289_v40, %v288_v39 }
  0x59   : > { %v292_v44 = vadd.f32 %v291_v43, %v290_v42 }
  0x5b   : > { %685 = vlog2.f32 %v292_v44 }
  0x5c   : > { %687 = vrcp.f32 %v292_v44 }
  0x65   : > { %v686_v16 = vpop.eup %685 }
  0x66   : > { %v688_v21 = vpop.eup %687 }
  0x6c   : > { %444 = vadd.xlane.f32.xlu1 %v443_v14 }
  0xbb   : > { %v321_v45 = vpop.permute.xlu1 %320  ;;  %v315_v46 = vpop.permute.xlu0 %314 }
  0xbc   : > { %vm325_vm4 = vcmp.eq.s32.totalorder %v315_v46, %v265_v11  ;;  %vm327_vm5 = vcmp.eq.s32.totalorder %v321_v45, %v265_v11 }
  0xbd   : > { %v591_v47 = vsel %vm325_vm4, 1.0, %v807_v12  ;;  %v593_v50 = vsel %vm327_vm5, 1.0, %v807_v12 }
  0xbe   : > { %v337_v51 = vmul.f32 %v678_v34, %v591_v47  ;;  %v348_v52 = vmul.f32 %v591_v47, %v274_v26  ;;  %v339_v55 = vmul.f32 %v682_v38, %v593_v50  ;;  %v350_v56 = vmul.f32 %v593_v50, %v276_v29 }
  0xbf   : > { %v324_v48 = vpop.permute.xlu1 %323  ;;  %v318_v49 = vpop.permute.xlu0 %317  ;;  %v421_v29 = vmul.f32 0.6931472, %v686_v16 }
  0xc0   : > { %vm328_vm6 = vcmp.eq.s32.totalorder %v324_v48, %v265_v11  ;;  %vm326_vm7 = vcmp.eq.s32.totalorder %v318_v49, %v265_v11  ;;  %v341_v61 = vsel %vm266_vm3, %v337_v51, 0.0  ;;  %v352_v62 = vsel %vm266_vm3, %v348_v52, 0.0 }
  0xc1   : > { %v594_v53 = vsel %vm328_vm6, 1.0, %v807_v12  ;;  %v592_v54 = vsel %vm326_vm7, 1.0, %v807_v12  ;;  %v344_v11 = vsel %vm266_vm3, %v339_v55, 0.0  ;;  %v355_v12 = vsel %vm266_vm3, %v350_v56, 0.0 }
  0xc2   : > { %v338_v57 = vmul.f32 %v680_v35, %v592_v54  ;;  %v349_v58 = vmul.f32 %v592_v54, %v275_v27  ;;  %v340_v1 = vmul.f32 %v684_v41, %v594_v53  ;;  %v351_v2 = vmul.f32 %v594_v53, %v277_v32 }
  0xc3   : > { %v389_v59 = vpop.permute.xlu1 %388  ;;  %v385_v60 = vpop.permute.xlu0 %384  ;;  %v454_v55 = vshrl.u32 %v411_v9, 7 }
  0xc4   : > { %v400_v63 = vmul.f32 %v592_v54, %v389_v59  ;;  %v399_v0 = vmul.f32 %v591_v47, %v385_v60  ;;  %v342_v3 = vsel %vm266_vm3, %v338_v57, 0.0  ;;  %v353_v4 = vsel %vm266_vm3, %v349_v58, 0.0 }
  0xc5   : > { %v343_v5 = vadd.f32 %v342_v3, %v341_v61  ;;  %v354_v6 = vadd.f32 %v353_v4, %v352_v62  ;;  %v346_v22 = vsel %vm266_vm3, %v340_v1, 0.0  ;;  %v357_v24 = vsel %vm266_vm3, %v351_v2, 0.0 }
  0xc6   : > { %v404_v7 = vsel %vm266_vm3, %v400_v63, 0.0  ;;  %v403_v8 = vsel %vm266_vm3, %v399_v0, 0.0  ;;  %vm458_vm10 = vcmp.eq.s32.totalorder %v454_v55, 1  ;;  %vm455_vm11 = vcmp.eq.s32.totalorder %v454_v55, 0 }
  0xc7   : > { %v397_v14 = vpop.permute.xlu1 %396  ;;  %v393_v15 = vpop.permute.xlu0 %392  ;;  %v345_v17 = vadd.f32 %v344_v11, %v343_v5  ;;  %v356_v18 = vadd.f32 %v355_v12, %v354_v6  ;;  %v405_v23 = vadd.f32 %v404_v7, %v403_v8  ;;  %vm459_vm12 = vmand %vm458_vm10, %vm456_vm9 }
  0xc8   : > { %v402_v19 = vmul.f32 %v594_v53, %v397_v14  ;;  %v401_v20 = vmul.f32 %v593_v50, %v393_v15  ;;  %vm457_vm13 = vmand %vm455_vm11, %vm456_vm9 }
  0xc9   : > { %v347_v26 = vadd.f32 %v346_v22, %v345_v17  ;;  %v358_v28 = vadd.f32 %v357_v24, %v356_v18 }
  0xca   : > { %v406_v25 = vsel %vm266_vm3, %v401_v20, 0.0  ;;  %v408_v30 = vsel %vm266_vm3, %v402_v19, 0.0 }
  0xcb   : > { %v407_v27 = vadd.f32 %v406_v25, %v405_v23  ;;  %v424_v31 = vmul.f32 %v688_v21, %v347_v26  ;;  %v422_v35 = vsub.f32 %v358_v28, %v421_v29 }
  0xcd   : > { %v409_v32 = vadd.f32 %v408_v30, %v407_v27  ;;  %v425_v33 = vsub.f32 1.0, %v424_v31 }
  0xcf   : > { %v428_v34 = vsub.f32 0.0, %v409_v32  ;;  %v426_v36 = vmax.f32 %v425_v33, 0.0 }
  0xd1   : > { %v429_v37 = vmul.f32 %v428_v34, %v422_v35  ;;  %v427_v38 = vmul.f32 %v426_v36, %v426_v36 }
  0xd3   : > { %v430_v39 = vmul.f32 %v429_v37, %v427_v38 }
  0xd5   : > { %v432_v40 = vsel %vm431_vm8, %v430_v39, 0.0 }
  0xd6   : > { %v433_v41 = vsel %vm266_vm3, %v432_v40, 0.0 }
  0xd7   : > { %434 = vadd.xlane.f32.xlu0 %v433_v41 }
  0xf9   : > { %v445_v42 = vpop.xlane.xlu1 %444 }
  0xfa   : > { %v446_v43 = vrot.slane %v445_v42, 4 }
  0xfc   : > { %v447_v44 = vadd.f32 %v446_v43, %v445_v42 }
  0xfe   : > { %v448_v45 = vrot.slane %v447_v44, 2 }
 0x100   : > { %v449_v49 = vadd.f32 %v448_v45, %v447_v44 }
 0x102   : > { %v450_v52 = vrot.slane %v449_v49, 1 }
 0x104   : > { %v451_v54 = vadd.f32 %v450_v52, %v449_v49 }
 0x164   : > { %v435_v46 = vpop.xlane.xlu0 %434 }
 0x165   : > { %v436_v47 = vrot.slane %v435_v46, 4 }
 0x167   : > { %v437_v48 = vadd.f32 %v436_v47, %v435_v46 }
 0x169   : > { %v438_v50 = vrot.slane %v437_v48, 2 }
 0x16b   : > { %v439_v51 = vadd.f32 %v438_v50, %v437_v48 }
 0x16d   : > { %v440_v53 = vrot.slane %v439_v51, 1 }
 0x16f   : > { %v441_v13 = vadd.f32 %v440_v53, %v439_v51 }
 0x171   : > { %605 = vpush %v441_v13 }
 0x172   : > { %607 = vpush %v451_v54 }
 0x1a2   : > { %s606_s8 = spop %605 }
 0x1a3   : > { %v462_v56 = vstv %s606_s8  ;;  %s608_s21 = spop %607 }
 0x1a4   : > { %v460_v57 = vstv %s608_s21 }
 0x1a5   : > { %v461_v58 = vsel %vm459_vm12, %v460_v57, 0.0 }
 0x1a6   : > { %v463_v9 = vsel %vm457_vm13, %v462_v56, %v461_v58 }
 0x1a7   : > { %464 = vst [vmem:[%s253_s9] sm:$0x3] %v463_v9 }
 0x1a8   : > { %732 = shalt.err (!%p729_p4)
}
 0x1a9   : > { %s733_s22 = scalar_lea.hbm %s1026_s10, 32  ;;  %s737_s26 = scalar_lea.hbm %s1079_s4, 64 }
 0x1aa   : > { %p734_p7 = scmp.ne.s32.totalorder %s1026_s10, %s733_s22  ;;  %p738_p1 = scmp.lt.u32.totalorder %s1026_s10, %s1079_s4 }
 0x1ab   : > { %p739_p3 = scmp.lt.u32.totalorder %s737_s26, %s733_s22  ;;  %p741_p9 = scmp.lt.u32.totalorder %s733_s22, %s1026_s10 }
 0x1ac   : > { %p735_p10 = pnand %p734_p7, %p1087_p11 }
 0x1ad   : > { %p740_p8 = por %p739_p3, %p738_p1 }
 0x1ae   : > { %p736_p12 = pneg %p735_p10 }
 0x1af   : > { %p742_p0 = por %p741_p9, %p740_p8 }
 0x1b1   : > { %p743_p6 = pnand %p742_p0, %p736_p12 }
 0x1b3   : > { %746 = shalt.err (!%p743_p6)
}
 0x1b4   : > { %611 = dma.vmem_to_hbm [thread:$0]  (%p1087_p11), %s1028_s11, 32, %s1026_s10, %s466_s18  }
 0x1b5 PF: > { %s492_s9 = sand.u32 1, %s781_s15   ;;  %p1088_p13 = scmp.ne.s32.totalorder %s1084_s30, 0 }
 0x1b6   : > { %p1089_p2 = scmp.ge.s32.totalorder %s801_s20, 2  ;;  %s493_s21 = scalar_lea.sflag [#allocation4], %s492_s9 }
 0x1b8   : > { %p618_p5 = pnand %p1089_p2, %p1088_p13 }
 0x1ba   : > { %776 = dma.done.wait (!%p618_p5), %s493_s21, 32  }
 0x1bb   : > { %778 = vsyncadd (!%p618_p5), %s493_s21, 4294967264  ;;  %s20_s20 = sadd.s32 1, %s801_s20   ;;  %s1090_s15 = smov %s785_s16 }
 0x1bc   : > { %p17_p4 = scmp.ge.s32.totalorder %s20_s20, 4   ;;  %s1091_s16 = smov %s789_s17 }
 0x1bd   : > { %s1092_s17 = smov %s890_s29  ;;  %s1093_s18 = smov %s797_s19 }
 0x1be   : > { %s1094_s19 = smov %s1096_s23  ;;  %19 = sbr.rel (!%p17_p4) target bundleno = 6 (0x6), region = 84 }
 0x1c5   :  { %498 = vsyncpa [#allocation3], 1 }
 0x1c6   :  { %500 = vsyncpa [#allocation3 + $0x1], 1 }
 0x1c7   :  { %501 = vsyncpa [#allocation4], 1 }
 0x1c8   :  { %503 = vsyncpa [#allocation4 + $0x1], 1 }

</bundles_post_ra>
